<compile_context>
chip_gen: v7x
topology: tpu7x:2x2x1
jax: 0.10.0
libtpu: 0.0.40
codegen_flags: <defaults>
</compile_context>

<pallas_src>
import jax
import jax.numpy as jnp
from jax import lax
from jax.experimental import pallas as pl
from jax.experimental.pallas import tpu as pltpu

LN_EPS = 1e-5  # torch.nn.LayerNorm default


def _round_up(a, m):
    return ((a + m - 1) // m) * m


def _vmem_capacity_bytes():
    try:
        return int(pltpu.get_tpu_info().vmem_capacity_bytes)
    except Exception:
        return 64 * 1024 * 1024  # conservative (v7x-sized) fallback


def _group_dot(v, r):
    """v @ r for the block-diagonal 1/Dout averaging matrix.

    Manual hi/lo split so the packed-path mean/var are ~2x-bf16 accurate even
    though both dots run at DEFAULT MXU precision (relies on 1/Dout being exact
    in bf16, which holds because the packed path requires Dout | 128).  Two tiny
    (tm,128)@(128,128) matmuls — free slack on a memory-bound kernel.
    """
    v_hi = v.astype(jnp.bfloat16).astype(jnp.float32)
    v_lo = v - v_hi
    return (jnp.dot(v_hi, r, preferred_element_type=jnp.float32)
            + jnp.dot(v_lo, r, preferred_element_type=jnp.float32))


def _kernel_plain(x_ref, w_ref, b_ref, g_ref, beta_ref, o_ref):
    # Dout >= 128 (or full-dim): LayerNorm reduction via XLU cross-lane reduce.
    # x / w are fed to the MXU in their streamed dtype (bf16 or f32), f32 accumulate.
    y = jnp.dot(x_ref[...], w_ref[...], preferred_element_type=jnp.float32) + b_ref[...]
    mean = jnp.mean(y, axis=-1, keepdims=True)
    c = y - mean
    var = jnp.mean(c * c, axis=-1, keepdims=True)
    yn = c * lax.rsqrt(var + LN_EPS)
    o_ref[...] = (yn * g_ref[...] + beta_ref[...]).astype(o_ref.dtype)


def _kernel_packed(x_ref, w_ref, b_ref, g_ref, beta_ref, r_ref, o_ref):
    # `pack` logical rows per 128-lane physical row.
    #   w_ref: block-diagonal (pack*Din, pack*Dout) weight  -> per-group projection
    #   r_ref: block-diagonal (pack*Dout, pack*Dout) matrix with 1/Dout entries
    #          -> y @ r is the per-group mean, already broadcast within each group.
    y = jnp.dot(x_ref[...], w_ref[...], preferred_element_type=jnp.float32) + b_ref[...]
    r = r_ref[...]
    mean = _group_dot(y, r)
    c = y - mean
    var = _group_dot(c * c, r)
    yn = c * lax.rsqrt(var + LN_EPS)
    o_ref[...] = (yn * g_ref[...] + beta_ref[...]).astype(o_ref.dtype)


def condition_adapter_forward(x, w, b, gamma, beta, *, tm=None):
    """Fused Linear + LayerNorm.

    x:     (B, S, condition_dim)
    w:     (condition_dim, cross_attention_dim)  == torch Linear.weight.T
    b:     (cross_attention_dim,)                == torch Linear.bias
    gamma: (cross_attention_dim,)                == torch LayerNorm.weight
    beta:  (cross_attention_dim,)                == torch LayerNorm.bias
    Returns (B, S, cross_attention_dim) in x.dtype (f32 math inside the kernel).
    """
    B, S, Din = x.shape
    Dout = w.shape[1]
    rows = B * S
    out_dtype = x.dtype

    # Keep the resident weight in the activation dtype (bf16 in -> bf16 weight;
    # DEFAULT MXU precision multiplies in bf16 either way, so no extra loss).
    w_k = w if w.dtype == x.dtype else w.astype(x.dtype)
    b32 = b.astype(jnp.float32)
    g32 = gamma.astype(jnp.float32)
    beta32 = beta.astype(jnp.float32)

    # Lane packing factor: make output stores 128-lane dense when Dout < 128.
    pack = 128 // Dout if (Dout < 128 and 128 % Dout == 0) else 1
    row_align = 8 * pack  # tile rows must map to whole 8-sublane packed rows

    Din_p, Dout_p = pack * Din, pack * Dout
    rows2 = _round_up(rows, pack)   # tiny pad only so rows group into packed rows
    rows_p = rows2 // pack

    # ---- flatten; pad only to a multiple of `pack` (NO tile-multiple pad) -------
    x2d = x.reshape(rows, Din)
    if rows2 != rows:
        x2d = jnp.pad(x2d, ((0, rows2 - rows), (0, 0)))

    if pack > 1:
        # Block-diagonal constants via kron (single fused op, no scatter chain).
        wp = jnp.kron(jnp.eye(pack, dtype=w_k.dtype), w_k)
        rmat = jnp.kron(jnp.eye(pack, dtype=jnp.float32),
                        jnp.full((Dout, Dout), 1.0 / Dout, jnp.float32))
        bp = jnp.tile(b32.reshape(1, Dout), (1, pack))
        gp = jnp.tile(g32.reshape(1, Dout), (1, pack))
        betap = jnp.tile(beta32.reshape(1, Dout), (1, pack))
        xp = x2d.reshape(rows_p, Din_p)
        operands = [xp, wp, bp, gp, betap, rmat]
        kernel = _kernel_packed
    else:
        bp = b32.reshape(1, Dout)
        gp = g32.reshape(1, Dout)
        betap = beta32.reshape(1, Dout)
        operands = [x2d, w_k, bp, gp, betap]
        kernel = _kernel_plain

    xi = jnp.dtype(x.dtype).itemsize
    oi = jnp.dtype(out_dtype).itemsize
    wi = jnp.dtype(w_k.dtype).itemsize

    # Generation-aware VMEM cap (~41 MiB on v7x's 64 MiB, ~83 MiB on v5e/v6e's 128 MiB).
    vmem_cap = int(_vmem_capacity_bytes() * 0.65)
    headroom = 2 * 1024 * 1024

    def launch(w_bufs):
        # resident (grid-invariant) operands: weight + b/gamma/beta (+ rmat), w_bufs copies
        resident = (Din_p * Dout_p * wi + 3 * Dout_p * 4) * w_bufs
        if pack > 1:
            resident += Dout_p * Dout_p * 4 * w_bufs
        # per logical row: double-buffered streamed x/out tiles + f32 intermediates
        # (y, c, yn + slack); no in-kernel f32 copies of x or w anymore.
        vmem_per_row = 2 * (Din * xi + Dout * oi) + 4 * Dout * 4

        if tm is None:
            budget = max(vmem_cap - resident - headroom, 4 * 1024 * 1024)
            t = max(row_align, min(1024, (budget // vmem_per_row) // row_align * row_align))
        else:
            t = _round_up(max(int(tm), row_align), row_align)
        t = min(t, _round_up(rows2, row_align))
        # Keep >= 4 grid steps when rows allow: 2 TCs (v7x megacore) x 2 steps/core
        # so next-input DMA / previous-output writeback still overlap compute.
        cap = ((rows2 // 4) // row_align) * row_align
        if cap >= row_align:
            t = min(t, cap)

        tm_p = t // pack
        grid = pl.cdiv(rows_p, tm_p)

        if w_bufs == 1:
            def const_spec(shape):
                return pl.BlockSpec(shape, lambda i: (0, 0), pipeline_mode=pl.Buffered(1))
        else:
            def const_spec(shape):
                return pl.BlockSpec(shape, lambda i: (0, 0))

        in_specs = [
            pl.BlockSpec((tm_p, Din_p), lambda i: (i, 0)),   # streamed input rows
            const_spec((Din_p, Dout_p)),                     # resident projection weight
            const_spec((1, Dout_p)),                         # projection bias (f32)
            const_spec((1, Dout_p)),                         # LN gamma (f32)
            const_spec((1, Dout_p)),                         # LN beta (f32)
        ]
        if pack > 1:
            in_specs.append(const_spec((Dout_p, Dout_p)))    # averaging matrix (f32)

        vmem_limit_bytes = int(min(vmem_cap,
                                   max(16 * 1024 * 1024,
                                       resident + t * vmem_per_row + headroom)))

        return pl.pallas_call(
            kernel,
            out_shape=jax.ShapeDtypeStruct((rows_p, Dout_p), out_dtype),
            grid_spec=pltpu.PrefetchScalarGridSpec(
                num_scalar_prefetch=0,
                grid=(grid,),
                in_specs=in_specs,
                out_specs=pl.BlockSpec((tm_p, Dout_p), lambda i: (i, 0)),
            ),
            compiler_params=pltpu.CompilerParams(
                dimension_semantics=("parallel",),
                vmem_limit_bytes=vmem_limit_bytes,
            ),
        )(*operands)

    if hasattr(pl, "Buffered"):
        try:
            out2d = launch(1)          # single-buffered resident operands
        except Exception:
            out2d = launch(2)          # fallback: default double buffering
    else:
        out2d = launch(2)

    out = out2d.reshape(rows2, Dout)
    if rows2 != rows:
        out = out[:rows]               # only present for the tiny pack-alignment pad
    return out.reshape(B, S, Dout)


def _reference_forward(x, w, b, gamma, beta):
    y = jnp.einsum("bsd,de->bse", x.astype(jnp.float32), w.astype(jnp.float32)) \
        + b.astype(jnp.float32)
    mean = jnp.mean(y, axis=-1, keepdims=True)
    var = jnp.mean((y - mean) ** 2, axis=-1, keepdims=True)
    yn = (y - mean) / jnp.sqrt(var + LN_EPS)
    return yn * gamma.astype(jnp.float32) + beta.astype(jnp.float32)


if __name__ == "__main__":
    key = jax.random.PRNGKey(0)
    kx, kw, kb, kg, kbeta = jax.random.split(key, 5)

    # config = {"condition_dim": 32, "cross_attention_dim": 64}
    B, S = 2, 8
    condition_dim, cross_attention_dim = 32, 64

    x = jax.random.normal(kx, (B, S, condition_dim), jnp.float32)
    w = jax.random.normal(kw, (condition_dim, cross_attention_dim), jnp.float32) * 0.05
    b = jax.random.normal(kb, (cross_attention_dim,), jnp.float32) * 0.02
    gamma = 1.0 + 0.1 * jax.random.normal(kg, (cross_attention_dim,), jnp.float32)
    beta = 0.1 * jax.random.normal(kbeta, (cross_attention_dim,), jnp.float32)

    # 1) f32, Dout = 64 < 128 -> lane-packed (pack=2) path.
    out = jax.block_until_ready(condition_adapter_forward(x, w, b, gamma, beta))
    ref = _reference_forward(x, w, b, gamma, beta)
    assert out.shape == (B, S, cross_attention_dim)
    assert jnp.allclose(out, ref, atol=1e-4, rtol=1e-4), "f32 packed path mismatch"

    # 2) bf16 streaming (f32 accumulation / LN inside the kernel), same packed path.
    xb, wb = x.astype(jnp.bfloat16), w.astype(jnp.bfloat16)
    bb, gb, bpb = b.astype(jnp.bfloat16), gamma.astype(jnp.bfloat16), beta.astype(jnp.bfloat16)
    out_bf16 = jax.block_until_ready(condition_adapter_forward(xb, wb, bb, gb, bpb))
    ref_bf16 = _reference_forward(xb.astype(jnp.float32), wb.astype(jnp.float32),
                                  bb.astype(jnp.float32), gb.astype(jnp.float32),
                                  bpb.astype(jnp.float32))
    assert out_bf16.dtype == jnp.bfloat16
    assert jnp.allclose(out_bf16.astype(jnp.float32), ref_bf16, atol=5e-2, rtol=5e-2), \
        "bf16 streaming mismatch"

    # 3) Dout >= 128 (already lane-dense) + ragged row count -> plain path, ragged
    #    last block handled by Pallas (no host pad / output slice).
    D2, B2, S2 = 256, 2, 7
    k1, k2, k3, k4, k5 = jax.random.split(jax.random.PRNGKey(1), 5)
    x2 = jax.random.normal(k1, (B2, S2, condition_dim), jnp.float32)
    w2 = jax.random.normal(k2, (condition_dim, D2), jnp.float32) * 0.05
    b2 = jax.random.normal(k3, (D2,), jnp.float32) * 0.02
    g2 = 1.0 + 0.1 * jax.random.normal(k4, (D2,), jnp.float32)
    beta2 = 0.1 * jax.random.normal(k5, (D2,), jnp.float32)
    out2 = jax.block_until_ready(condition_adapter_forward(x2, w2, b2, g2, beta2))
    ref2 = _reference_forward(x2, w2, b2, g2, beta2)
    assert out2.shape == (B2, S2, D2)
    assert jnp.allclose(out2, ref2, atol=1e-4, rtol=1e-4), "f32 plain path mismatch"

    print("KERNEL_OK")
</pallas_src>

<mosaic_0001>
module attributes {stable_mosaic.version = 11 : i64} {
  func.func @_kernel_packed(%arg0: i32, %arg1: memref<8x64xf32, #tpu.memory_space<vmem>>, %arg2: memref<64x128xf32, #tpu.memory_space<vmem>>, %arg3: memref<1x128xf32, #tpu.memory_space<vmem>>, %arg4: memref<1x128xf32, #tpu.memory_space<vmem>>, %arg5: memref<1x128xf32, #tpu.memory_space<vmem>>, %arg6: memref<128x128xf32, #tpu.memory_space<vmem>>, %arg7: memref<8x128xf32, #tpu.memory_space<vmem>>) attributes {dimension_semantics = [#tpu.dimension_semantics<parallel>], iteration_bounds = array<i64: 1>, scalar_prefetch = 0 : i64, scratch_operands = 0 : i64, tpu.core_type = #tpu.core_type<tc>, window_params = [{transform_indices = @transform_0, window_bounds = array<i64: 8, 64>}, {pipeline_mode = #tpu.pipeline_mode<synchronous>, transform_indices = @transform_1, window_bounds = array<i64: 64, 128>}, {pipeline_mode = #tpu.pipeline_mode<synchronous>, transform_indices = @transform_2, window_bounds = array<i64: 1, 128>}, {pipeline_mode = #tpu.pipeline_mode<synchronous>, transform_indices = @transform_3, window_bounds = array<i64: 1, 128>}, {pipeline_mode = #tpu.pipeline_mode<synchronous>, transform_indices = @transform_4, window_bounds = array<i64: 1, 128>}, {pipeline_mode = #tpu.pipeline_mode<synchronous>, transform_indices = @transform_5, window_bounds = array<i64: 128, 128>}, {transform_indices = @transform_6, window_bounds = array<i64: 8, 128>}]} {
    %c0 = arith.constant 0 : index
    %c0_0 = arith.constant 0 : index
    %0 = vector.load %arg1[%c0, %c0_0] : memref<8x64xf32, #tpu.memory_space<vmem>>, vector<8x64xf32>
    %c0_1 = arith.constant 0 : index
    %c0_2 = arith.constant 0 : index
    %1 = vector.load %arg2[%c0_1, %c0_2] : memref<64x128xf32, #tpu.memory_space<vmem>>, vector<64x128xf32>
    %cst = arith.constant dense<0.000000e+00> : vector<8x128xf32>
    %2 = tpu.matmul %0, %1, %cst {dimension_numbers = #tpu.dot_dimension_numbers<[1], [0], [0], [1], [0, 0, 1, 1], [], []>} : vector<8x64xf32>, vector<64x128xf32>, vector<8x128xf32> -> vector<8x128xf32>
    %c0_3 = arith.constant 0 : index
    %c0_4 = arith.constant 0 : index
    %3 = vector.load %arg3[%c0_3, %c0_4] : memref<1x128xf32, #tpu.memory_space<vmem>>, vector<1x128xf32>
    %4 = vector.broadcast %3 : vector<1x128xf32> to vector<8x128xf32>
    %5 = arith.addf %2, %4 : vector<8x128xf32>
    %c0_5 = arith.constant 0 : index
    %c0_6 = arith.constant 0 : index
    %6 = vector.load %arg6[%c0_5, %c0_6] : memref<128x128xf32, #tpu.memory_space<vmem>>, vector<128x128xf32>
    %7 = arith.truncf %5 : vector<8x128xf32> to vector<8x128xbf16>
    %8 = arith.extf %7 : vector<8x128xbf16> to vector<8x128xf32>
    %9 = arith.subf %5, %8 : vector<8x128xf32>
    %cst_7 = arith.constant dense<0.000000e+00> : vector<8x128xf32>
    %10 = tpu.matmul %8, %6, %cst_7 {dimension_numbers = #tpu.dot_dimension_numbers<[1], [0], [0], [1], [0, 0, 1, 1], [], []>} : vector<8x128xf32>, vector<128x128xf32>, vector<8x128xf32> -> vector<8x128xf32>
    %cst_8 = arith.constant dense<0.000000e+00> : vector<8x128xf32>
    %11 = tpu.matmul %9, %6, %cst_8 {dimension_numbers = #tpu.dot_dimension_numbers<[1], [0], [0], [1], [0, 0, 1, 1], [], []>} : vector<8x128xf32>, vector<128x128xf32>, vector<8x128xf32> -> vector<8x128xf32>
    %12 = arith.addf %10, %11 : vector<8x128xf32>
    %13 = arith.subf %5, %12 : vector<8x128xf32>
    %14 = arith.mulf %13, %13 : vector<8x128xf32>
    %15 = arith.truncf %14 : vector<8x128xf32> to vector<8x128xbf16>
    %16 = arith.extf %15 : vector<8x128xbf16> to vector<8x128xf32>
    %17 = arith.subf %14, %16 : vector<8x128xf32>
    %cst_9 = arith.constant dense<0.000000e+00> : vector<8x128xf32>
    %18 = tpu.matmul %16, %6, %cst_9 {dimension_numbers = #tpu.dot_dimension_numbers<[1], [0], [0], [1], [0, 0, 1, 1], [], []>} : vector<8x128xf32>, vector<128x128xf32>, vector<8x128xf32> -> vector<8x128xf32>
    %cst_10 = arith.constant dense<0.000000e+00> : vector<8x128xf32>
    %19 = tpu.matmul %17, %6, %cst_10 {dimension_numbers = #tpu.dot_dimension_numbers<[1], [0], [0], [1], [0, 0, 1, 1], [], []>} : vector<8x128xf32>, vector<128x128xf32>, vector<8x128xf32> -> vector<8x128xf32>
    %20 = arith.addf %18, %19 : vector<8x128xf32>
    %cst_11 = arith.constant 9.99999974E-6 : f32
    %21 = vector.broadcast %cst_11 : f32 to vector<8x128xf32>
    %22 = arith.addf %20, %21 : vector<8x128xf32>
    %23 = math.rsqrt %22 : vector<8x128xf32>
    %24 = arith.mulf %13, %23 : vector<8x128xf32>
    %c0_12 = arith.constant 0 : index
    %c0_13 = arith.constant 0 : index
    %25 = vector.load %arg4[%c0_12, %c0_13] : memref<1x128xf32, #tpu.memory_space<vmem>>, vector<1x128xf32>
    %26 = vector.broadcast %25 : vector<1x128xf32> to vector<8x128xf32>
    %27 = arith.mulf %24, %26 : vector<8x128xf32>
    %c0_14 = arith.constant 0 : index
    %c0_15 = arith.constant 0 : index
    %28 = vector.load %arg5[%c0_14, %c0_15] : memref<1x128xf32, #tpu.memory_space<vmem>>, vector<1x128xf32>
    %29 = vector.broadcast %28 : vector<1x128xf32> to vector<8x128xf32>
    %30 = arith.addf %27, %29 : vector<8x128xf32>
    %c0_16 = arith.constant 0 : index
    %c0_17 = arith.constant 0 : index
    %31 = vector.load %arg7[%c0_16, %c0_17] : memref<8x128xf32, #tpu.memory_space<vmem>>, vector<8x128xf32>
    tpu.vector_store %arg7[%c0_16, %c0_17], %30 {strides = array<i32>} : memref<8x128xf32, #tpu.memory_space<vmem>>, vector<8x128xf32>,
    return
  }
  func.func @transform_0(%arg0: i32) -> (i32, i32) {
    %c0_i32 = arith.constant 0 : i32
    %c0_i32_0 = arith.constant 0 : i32
    return %arg0, %c0_i32 : i32, i32
  }
  func.func @transform_1(%arg0: i32) -> (i32, i32) {
    %c0_i32 = arith.constant 0 : i32
    %c0_i32_0 = arith.constant 0 : i32
    %c0_i32_1 = arith.constant 0 : i32
    return %c0_i32, %c0_i32_0 : i32, i32
  }
  func.func @transform_2(%arg0: i32) -> (i32, i32) {
    %c0_i32 = arith.constant 0 : i32
    %c0_i32_0 = arith.constant 0 : i32
    %c0_i32_1 = arith.constant 0 : i32
    return %c0_i32, %c0_i32_0 : i32, i32
  }
  func.func @transform_3(%arg0: i32) -> (i32, i32) {
    %c0_i32 = arith.constant 0 : i32
    %c0_i32_0 = arith.constant 0 : i32
    %c0_i32_1 = arith.constant 0 : i32
    return %c0_i32, %c0_i32_0 : i32, i32
  }
  func.func @transform_4(%arg0: i32) -> (i32, i32) {
    %c0_i32 = arith.constant 0 : i32
    %c0_i32_0 = arith.constant 0 : i32
    %c0_i32_1 = arith.constant 0 : i32
    return %c0_i32, %c0_i32_0 : i32, i32
  }
  func.func @transform_5(%arg0: i32) -> (i32, i32) {
    %c0_i32 = arith.constant 0 : i32
    %c0_i32_0 = arith.constant 0 : i32
    %c0_i32_1 = arith.constant 0 : i32
    return %c0_i32, %c0_i32_0 : i32, i32
  }
  func.func @transform_6(%arg0: i32) -> (i32, i32) {
    %c0_i32 = arith.constant 0 : i32
    %c0_i32_0 = arith.constant 0 : i32
    return %arg0, %c0_i32 : i32, i32
  }
}

module attributes {stable_mosaic.version = 11 : i64} {
  func.func @_kernel_packed(%arg0: i32, %arg1: memref<8x64xf32, #tpu.memory_space<vmem>>, %arg2: memref<64x128xf32, #tpu.memory_space<vmem>>, %arg3: memref<1x128xf32, #tpu.memory_space<vmem>>, %arg4: memref<1x128xf32, #tpu.memory_space<vmem>>, %arg5: memref<1x128xf32, #tpu.memory_space<vmem>>, %arg6: memref<128x128xf32, #tpu.memory_space<vmem>>, %arg7: memref<8x128xf32, #tpu.memory_space<vmem>>) attributes {dimension_semantics = [#tpu.dimension_semantics<parallel>], iteration_bounds = array<i64: 1>, scalar_prefetch = 0 : i64, scratch_operands = 0 : i64, tpu.core_type = #tpu.core_type<tc>, window_params = [{transform_indices = @transform_0, window_bounds = array<i64: 8, 64>}, {pipeline_mode = #tpu.pipeline_mode<synchronous>, transform_indices = @transform_1, window_bounds = array<i64: 64, 128>}, {pipeline_mode = #tpu.pipeline_mode<synchronous>, transform_indices = @transform_2, window_bounds = array<i64: 1, 128>}, {pipeline_mode = #tpu.pipeline_mode<synchronous>, transform_indices = @transform_3, window_bounds = array<i64: 1, 128>}, {pipeline_mode = #tpu.pipeline_mode<synchronous>, transform_indices = @transform_4, window_bounds = array<i64: 1, 128>}, {pipeline_mode = #tpu.pipeline_mode<synchronous>, transform_indices = @transform_5, window_bounds = array<i64: 128, 128>}, {transform_indices = @transform_6, window_bounds = array<i64: 8, 128>}]} {
    %c0 = arith.constant 0 : index
    %c0_0 = arith.constant 0 : index
    %0 = vector.load %arg1[%c0, %c0_0] : memref<8x64xf32, #tpu.memory_space<vmem>>, vector<8x64xf32>
    %c0_1 = arith.constant 0 : index
    %c0_2 = arith.constant 0 : index
    %1 = vector.load %arg2[%c0_1, %c0_2] : memref<64x128xf32, #tpu.memory_space<vmem>>, vector<64x128xf32>
    %cst = arith.constant dense<0.000000e+00> : vector<8x128xf32>
    %2 = tpu.matmul %0, %1, %cst {dimension_numbers = #tpu.dot_dimension_numbers<[1], [0], [0], [1], [0, 0, 1, 1], [], []>} : vector<8x64xf32>, vector<64x128xf32>, vector<8x128xf32> -> vector<8x128xf32>
    %c0_3 = arith.constant 0 : index
    %c0_4 = arith.constant 0 : index
    %3 = vector.load %arg3[%c0_3, %c0_4] : memref<1x128xf32, #tpu.memory_space<vmem>>, vector<1x128xf32>
    %4 = vector.broadcast %3 : vector<1x128xf32> to vector<8x128xf32>
    %5 = arith.addf %2, %4 : vector<8x128xf32>
    %c0_5 = arith.constant 0 : index
    %c0_6 = arith.constant 0 : index
    %6 = vector.load %arg6[%c0_5, %c0_6] : memref<128x128xf32, #tpu.memory_space<vmem>>, vector<128x128xf32>
    %7 = arith.truncf %5 : vector<8x128xf32> to vector<8x128xbf16>
    %8 = arith.extf %7 : vector<8x128xbf16> to vector<8x128xf32>
    %9 = arith.subf %5, %8 : vector<8x128xf32>
    %cst_7 = arith.constant dense<0.000000e+00> : vector<8x128xf32>
    %10 = tpu.matmul %8, %6, %cst_7 {dimension_numbers = #tpu.dot_dimension_numbers<[1], [0], [0], [1], [0, 0, 1, 1], [], []>} : vector<8x128xf32>, vector<128x128xf32>, vector<8x128xf32> -> vector<8x128xf32>
    %cst_8 = arith.constant dense<0.000000e+00> : vector<8x128xf32>
    %11 = tpu.matmul %9, %6, %cst_8 {dimension_numbers = #tpu.dot_dimension_numbers<[1], [0], [0], [1], [0, 0, 1, 1], [], []>} : vector<8x128xf32>, vector<128x128xf32>, vector<8x128xf32> -> vector<8x128xf32>
    %12 = arith.addf %10, %11 : vector<8x128xf32>
    %13 = arith.subf %5, %12 : vector<8x128xf32>
    %14 = arith.mulf %13, %13 : vector<8x128xf32>
    %15 = arith.truncf %14 : vector<8x128xf32> to vector<8x128xbf16>
    %16 = arith.extf %15 : vector<8x128xbf16> to vector<8x128xf32>
    %17 = arith.subf %14, %16 : vector<8x128xf32>
    %cst_9 = arith.constant dense<0.000000e+00> : vector<8x128xf32>
    %18 = tpu.matmul %16, %6, %cst_9 {dimension_numbers = #tpu.dot_dimension_numbers<[1], [0], [0], [1], [0, 0, 1, 1], [], []>} : vector<8x128xf32>, vector<128x128xf32>, vector<8x128xf32> -> vector<8x128xf32>
    %cst_10 = arith.constant dense<0.000000e+00> : vector<8x128xf32>
    %19 = tpu.matmul %17, %6, %cst_10 {dimension_numbers = #tpu.dot_dimension_numbers<[1], [0], [0], [1], [0, 0, 1, 1], [], []>} : vector<8x128xf32>, vector<128x128xf32>, vector<8x128xf32> -> vector<8x128xf32>
    %20 = arith.addf %18, %19 : vector<8x128xf32>
    %cst_11 = arith.constant 9.99999974E-6 : f32
    %21 = vector.broadcast %cst_11 : f32 to vector<8x128xf32>
    %22 = arith.addf %20, %21 : vector<8x128xf32>
    %23 = math.rsqrt %22 : vector<8x128xf32>
    %24 = arith.mulf %13, %23 : vector<8x128xf32>
    %c0_12 = arith.constant 0 : index
    %c0_13 = arith.constant 0 : index
    %25 = vector.load %arg4[%c0_12, %c0_13] : memref<1x128xf32, #tpu.memory_space<vmem>>, vector<1x128xf32>
    %26 = vector.broadcast %25 : vector<1x128xf32> to vector<8x128xf32>
    %27 = arith.mulf %24, %26 : vector<8x128xf32>
    %c0_14 = arith.constant 0 : index
    %c0_15 = arith.constant 0 : index
    %28 = vector.load %arg5[%c0_14, %c0_15] : memref<1x128xf32, #tpu.memory_space<vmem>>, vector<1x128xf32>
    %29 = vector.broadcast %28 : vector<1x128xf32> to vector<8x128xf32>
    %30 = arith.addf %27, %29 : vector<8x128xf32>
    %c0_16 = arith.constant 0 : index
    %c0_17 = arith.constant 0 : index
    %31 = vector.load %arg7[%c0_16, %c0_17] : memref<8x128xf32, #tpu.memory_space<vmem>>, vector<8x128xf32>
    tpu.vector_store %arg7[%c0_16, %c0_17], %30 {strides = array<i32>} : memref<8x128xf32, #tpu.memory_space<vmem>>, vector<8x128xf32>,
    return
  }
  func.func @transform_0(%arg0: i32) -> (i32, i32) {
    %c0_i32 = arith.constant 0 : i32
    %c0_i32_0 = arith.constant 0 : i32
    return %arg0, %c0_i32 : i32, i32
  }
  func.func @transform_1(%arg0: i32) -> (i32, i32) {
    %c0_i32 = arith.constant 0 : i32
    %c0_i32_0 = arith.constant 0 : i32
    %c0_i32_1 = arith.constant 0 : i32
    return %c0_i32, %c0_i32_0 : i32, i32
  }
  func.func @transform_2(%arg0: i32) -> (i32, i32) {
    %c0_i32 = arith.constant 0 : i32
    %c0_i32_0 = arith.constant 0 : i32
    %c0_i32_1 = arith.constant 0 : i32
    return %c0_i32, %c0_i32_0 : i32, i32
  }
  func.func @transform_3(%arg0: i32) -> (i32, i32) {
    %c0_i32 = arith.constant 0 : i32
    %c0_i32_0 = arith.constant 0 : i32
    %c0_i32_1 = arith.constant 0 : i32
    return %c0_i32, %c0_i32_0 : i32, i32
  }
  func.func @transform_4(%arg0: i32) -> (i32, i32) {
    %c0_i32 = arith.constant 0 : i32
    %c0_i32_0 = arith.constant 0 : i32
    %c0_i32_1 = arith.constant 0 : i32
    return %c0_i32, %c0_i32_0 : i32, i32
  }
  func.func @transform_5(%arg0: i32) -> (i32, i32) {
    %c0_i32 = arith.constant 0 : i32
    %c0_i32_0 = arith.constant 0 : i32
    %c0_i32_1 = arith.constant 0 : i32
    return %c0_i32, %c0_i32_0 : i32, i32
  }
  func.func @transform_6(%arg0: i32) -> (i32, i32) {
    %c0_i32 = arith.constant 0 : i32
    %c0_i32_0 = arith.constant 0 : i32
    return %arg0, %c0_i32 : i32, i32
  }
}

</mosaic_0001>

<bundles_post_ra>
// kernel: tpu_custom_call.1
= control target key start
LH: loop header
LB: loop body
LE: loop exit
PB: predicated region body
PF: predicated region fallthrough
CT: control target
= control target key end

     0   :  { %11 = vsyncpa [#allocation3], 0  ;;  %s1137_s0 = inlined_call_operand.hbm [shape: f32[8,64], index: 0, kind: input, shape index: {}]   ;;  %s1138_s1 = inlined_call_operand.hbm [shape: f32[64,128], index: 1, kind: input, shape index: {}]   ;;  %s1139_s2 = inlined_call_operand.vmem [shape: f32[1,128], index: 2, kind: input, shape index: {}]   ;;  %s1140_s3 = inlined_call_operand.vmem [shape: f32[1,128], index: 3, kind: input, shape index: {}]   ;;  %s1141_s4 = inlined_call_operand.vmem [shape: f32[1,128], index: 4, kind: input, shape index: {}]   ;;  %s1142_s5 = inlined_call_operand.hbm [shape: f32[128,128], index: 5, kind: input, shape index: {}]   ;;  %s1143_s6 = inlined_call_operand.hbm [shape: f32[8,128], index: 6, kind: output, shape index: {}]  }
   0x1   :  { %12 = vsyncpa [#allocation6], 0 }
   0x2   :  { %13 = vsyncpa [#allocation4], 0  ;;  %s948_s21 = smov [#allocation5]   ;;  %s854_s25 = scalar_lea.hbm %s1138_s1, 1024 }
   0x3   :  { %s29_s22 = sshll.u32 %s948_s21, 4  ;;  %p855_p0 = scmp.ne.s32.totalorder %s1138_s1, %s854_s25  ;;  %s30_s22 = int_to_ptr.vmem [resolvable:$true] %s29_s22 }
   0x4   :  { %p858_p1 = scmp.lt.u32.totalorder %s854_s25, %s1138_s1 }
   0x6   :  { %p860_p2 = pnand %p858_p1, %p855_p0 }
   0x8   :  { %863 = shalt.err (!%p860_p2)
}
   0x9   :  { %s864_s30 = scalar_lea.vmem %s30_s22, 1024  ;;  %p869_p4 = scmp.lt.s32.totalorder %s30_s22, %s30_s22 }
   0xa   :  { %p865_p3 = scmp.ne.s32.totalorder %s30_s22, %s864_s30  ;;  %p870_p5 = scmp.lt.s32.totalorder %s864_s30, %s864_s30 }
   0xc   :  { %p871_p6 = por %p870_p5, %p869_p4 }
   0xe   :  { %p872_p7 = pnand %p871_p6, %p865_p3 }
  0x10   :  { %875 = shalt.err (!%p872_p7)
}
  0x11   :  { %s949_s7 = smov 128   ;;  %s950_s8 = smov 8  }
  0x12   :  { %35 = dma.hbm_to_vmem [thread:$0]  %s1138_s1, 1024, %s30_s22, [#allocation6], %s949_s7, %s949_s7, %s950_s8  }
  0x13   :  { %s951_s11 = smov [#allocation2]   ;;  %s952_s13 = smov [#allocation7]  }
  0x14   :  { %s20_s12 = sshll.u32 %s951_s11, 4  ;;  %s47_s14 = sshll.u32 %s952_s13, 4  ;;  %s21_s12 = int_to_ptr.vmem [resolvable:$true] %s20_s12  ;;  %s48_s14 = int_to_ptr.vmem [resolvable:$true] %s47_s14 }
  0x15   :  { %s876_s17 = scalar_lea.hbm %s1137_s0, 128 }
  0x16   :  { %p877_p8 = scmp.ne.s32.totalorder %s1137_s0, %s876_s17  ;;  %p880_p9 = scmp.lt.u32.totalorder %s876_s17, %s1137_s0 }
  0x18   :  { %p882_p10 = pnand %p880_p9, %p877_p8 }
  0x1a   :  { %885 = shalt.err (!%p882_p10)
}
  0x1b   :  { %s886_s1 = scalar_lea.vmem %s21_s12, 128  ;;  %p891_p12 = scmp.lt.s32.totalorder %s21_s12, %s21_s12 }
  0x1c   :  { %p887_p11 = scmp.ne.s32.totalorder %s21_s12, %s886_s1  ;;  %p892_p13 = scmp.lt.s32.totalorder %s886_s1, %s886_s1 }
  0x1e   :  { %p893_p0 = por %p892_p13, %p891_p12 }
  0x20   :  { %p894_p1 = pnand %p893_p0, %p887_p11 }
  0x22   :  { %897 = shalt.err (!%p894_p1)
}
  0x23   :  { %23 = dma.hbm_to_vmem [thread:$0]  %s1137_s0, 128, %s21_s12, [#allocation3]  }
  0x24   :  { %s898_s26 = scalar_lea.hbm %s1142_s5, 2048 }
  0x25   :  { %p899_p2 = scmp.ne.s32.totalorder %s1142_s5, %s898_s26  ;;  %p902_p3 = scmp.lt.u32.totalorder %s898_s26, %s1142_s5 }
  0x27   :  { %p904_p4 = pnand %p902_p3, %p899_p2 }
  0x29   :  { %907 = shalt.err (!%p904_p4)
}
  0x2a   :  { %s908_s9 = scalar_lea.vmem %s48_s14, 2048  ;;  %p913_p6 = scmp.lt.s32.totalorder %s48_s14, %s48_s14 }
  0x2b   :  { %p909_p5 = scmp.ne.s32.totalorder %s48_s14, %s908_s9  ;;  %p914_p7 = scmp.lt.s32.totalorder %s908_s9, %s908_s9 }
  0x2d   :  { %p915_p8 = por %p914_p7, %p913_p6 }
  0x2f   :  { %p916_p9 = pnand %p915_p8, %p909_p5 }
  0x31   :  { %919 = shalt.err (!%p916_p9)
}
  0x32   :  { %53 = dma.hbm_to_vmem [thread:$0]  %s1142_s5, 2048, %s48_s14, [#allocation6], %s949_s7, %s949_s7, %s950_s8  }
  0x33   :  { %942 = dma.done.wait [#allocation3], 128  }
  0x34   :  { %943 = vsyncadd [#allocation3], 4294967168 }
  0x35   :  { %944 = dma.done.wait [#allocation6], 3072  }
  0x36   :  { %945 = vsyncadd [#allocation6], 4294964224  ;;  %v953_v0 = vmov 0.0|0.0   ;;  %vm954_vm0 = vmmov 0   ;;  %v955_v1 = vmov 0.0   ;;  %v64_v2 = vld [vmem:[#allocation5] sm:$0xff] }
  0x37   :  { %733 = vmatprep.subr.bf16.mxu0 %v953_v0  ;;  %590 = vmatprep.mubr.msk.f32.mxu0 %vm954_vm0, %v955_v1  ;;  %v65_v3 = vld [vmem:[#allocation5 + $0x8] sm:$0xff]  ;;  %v66_v4 = vld [vmem:[#allocation5 + $0x10] sm:$0xff]  ;;  %v67_v6 = vld [vmem:[#allocation5 + $0x18] sm:$0xff]  ;;  %vm79_vm1 = vcmask 523264   ;;  %s956_s13 = smov [#allocation8]  }
  0x38   :  { %745 = vmatprep.subr.bf16.mxu1 %v953_v0  ;;  %625 = vmatprep.mubr.msk.f32.mxu1 %vm954_vm0, %v955_v1  ;;  %v734_v5 = vpack.c.bf16 %v65_v3, %v64_v2  ;;  %v737_v7 = vpack.c.bf16 %v67_v6, %v66_v4  ;;  %v153_v8 = vld [vmem:[#allocation7] sm:$0xff]  ;;  %v154_v9 = vld [vmem:[#allocation7 + $0x8] sm:$0xff]  ;;  %v155_v10 = vld [vmem:[#allocation7 + $0x10] sm:$0xff]  ;;  %s483_s14 = sshll.u32 %s956_s13, 4  ;;  %s484_s14 = int_to_ptr.vmem [resolvable:$true] %s483_s14 }
  0x39   :  { %v68_v11 = vld [vmem:[#allocation5 + $0x20] sm:$0xff]  ;;  %v69_v12 = vld [vmem:[#allocation5 + $0x28] sm:$0xff]  ;;  %v1041_v13 = vpack.c.bf16 %v154_v9, %v153_v8  ;;  %v156_v14 = vld [vmem:[#allocation7 + $0x18] sm:$0xff]  ;;  %s920_s15 = scalar_lea.vmem %s484_s14, 128  ;;  %p925_p11 = scmp.lt.s32.totalorder %s484_s14, %s484_s14 }
  0x3a   :  { %735 = vmatpush3.bf16.msra.mxu0 %v734_v5  ;;  %v1044_v15 = vpack.c.bf16 %v156_v14, %v155_v10  ;;  %v740_v16 = vpack.c.bf16 %v69_v12, %v68_v11  ;;  %v157_v17 = vld [vmem:[#allocation7 + $0x20] sm:$0xff]  ;;  %v158_v18 = vld [vmem:[#allocation7 + $0x28] sm:$0xff]  ;;  %v70_v19 = vld [vmem:[#allocation5 + $0x30] sm:$0xff]  ;;  %p921_p10 = scmp.ne.s32.totalorder %s484_s14, %s920_s15  ;;  %p926_p12 = scmp.lt.s32.totalorder %s920_s15, %s920_s15 }
  0x3b   :  { %736 = vmatprep.subr.bf16.mxu0 %v953_v0  ;;  %747 = vmatpush3.bf16.msra.mxu1 %v1041_v13  ;;  %v71_v20 = vld [vmem:[#allocation5 + $0x38] sm:$0xff]  ;;  %v1049_v21 = vpack.c.bf16 %v158_v18, %v157_v17  ;;  %v159_v23 = vld [vmem:[#allocation7 + $0x30] sm:$0xff]  ;;  %v161_v27 = vld [vmem:[#allocation7 + $0x40] sm:$0xff] }
  0x3c   :  { %748 = vmatprep.subr.bf16.mxu1 %v953_v0  ;;  %v743_v22 = vpack.c.bf16 %v71_v20, %v70_v19  ;;  %v160_v24 = vld [vmem:[#allocation7 + $0x38] sm:$0xff]  ;;  %v162_v28 = vld [vmem:[#allocation7 + $0x48] sm:$0xff]  ;;  %v163_v30 = vld [vmem:[#allocation7 + $0x50] sm:$0xff]  ;;  %p927_p13 = por %p926_p12, %p925_p11 }
  0x3d   :  { %v1054_v25 = vpack.c.bf16 %v160_v24, %v159_v23  ;;  %v63_v26 = vld [vmem:[#allocation2] sm:$0xff]  ;;  %v1059_v29 = vpack.c.bf16 %v162_v28, %v161_v27  ;;  %v165_v33 = vld [vmem:[#allocation7 + $0x60] sm:$0xff]  ;;  %v166_v34 = vld [vmem:[#allocation7 + $0x68] sm:$0xff] }
  0x3e   :  { %738 = vmatpush3.bf16.msra.mxu0 %v737_v7  ;;  %v164_v31 = vld [vmem:[#allocation7 + $0x58] sm:$0xff]  ;;  %v764_v35 = vpack.c.bf16 %v166_v34, %v165_v33  ;;  %v167_v36 = vld [vmem:[#allocation7 + $0x70] sm:$0xff]  ;;  %p928_p0 = pnand %p927_p13, %p921_p10 }
  0x3f   :  { %739 = vmatprep.subr.bf16.mxu0 %v953_v0  ;;  %750 = vmatpush3.bf16.msra.mxu1 %v1044_v15  ;;  %v1067_v32 = vpack.c.bf16 %v164_v31, %v163_v30  ;;  %v168_v37 = vld [vmem:[#allocation7 + $0x78] sm:$0xff] }
  0x40   :  { %751 = vmatprep.subr.bf16.mxu1 %v953_v0  ;;  %v767_v38 = vpack.c.bf16 %v168_v37, %v167_v36  ;;  %v493_v39 = vld [vmem:[%s1139_s2] ss:$0 sm:$0xff] }
  0x41   :  { %v495_v60 = vld [vmem:[%s1140_s3] ss:$0 sm:$0xff] }
  0x42   :  { %741 = vmatpush3.bf16.msra.mxu0 %v740_v16  ;;  %v496_v62 = vld [vmem:[%s1141_s4] ss:$0 sm:$0xff] }
  0x43   :  { %742 = vmatprep.subr.bf16.mxu0 %v953_v0  ;;  %753 = vmatpush3.bf16.msra.mxu1 %v1049_v21 }
  0x44   :  { %754 = vmatprep.subr.bf16.mxu1 %v953_v0 }
  0x46   :  { %744 = vmatpush3.bf16.msra.mxu0 %v743_v22 }
  0x47   :  { %793 = vmatprep.subr.bf16.mxu0 %v953_v0  ;;  %756 = vmatpush3.bf16.msra.mxu1 %v1054_v25 }
  0x48   :  { %757 = vmatprep.subr.bf16.mxu1 %v953_v0 }
  0x49   :  { %591 = vmatmul.mubr.msk.f32.vlgmr.msra.gmra.mrb[0].mxu0 %vm79_vm1, %v63_v26 }
  0x4a   :  { %795 = vmatpush3.bf16.msra.mxu0 %v1041_v13  ;;  %695 = vmatprep.mubr.msk.f32.mxu0 %vm954_vm0, %v955_v1 }
  0x4b   :  { %796 = vmatprep.subr.bf16.mxu0 %v953_v0  ;;  %759 = vmatpush3.bf16.msra.mxu1 %v1059_v29 }
  0x4c   :  { %760 = vmatprep.subr.bf16.mxu1 %v953_v0 }
  0x4e   :  { %798 = vmatpush3.bf16.msra.mxu0 %v1044_v15 }
  0x4f   :  { %799 = vmatprep.subr.bf16.mxu0 %v953_v0  ;;  %762 = vmatpush3.bf16.msra.mxu1 %v1067_v32 }
  0x50   :  { %763 = vmatprep.subr.bf16.mxu1 %v953_v0 }
  0x52   :  { %801 = vmatpush3.bf16.msra.mxu0 %v1049_v21 }
  0x53   :  { %802 = vmatprep.subr.bf16.mxu0 %v953_v0  ;;  %765 = vmatpush3.bf16.msra.mxu1 %v764_v35 }
  0x54   :  { %766 = vmatprep.subr.bf16.mxu1 %v953_v0 }
  0x56   :  { %804 = vmatpush3.bf16.msra.mxu0 %v1054_v25 }
  0x57   :  { %805 = vmatprep.subr.bf16.mxu0 %v953_v0  ;;  %768 = vmatpush3.bf16.msra.mxu1 %v767_v38 }
  0x58   :  { %769 = vmatprep.subr.bf16.mxu1 %v953_v0 }
  0x5a   :  { %807 = vmatpush3.bf16.msra.mxu0 %v1059_v29 }
  0x5b   :  { %808 = vmatprep.subr.bf16.mxu0 %v953_v0 }
  0x5e   :  { %810 = vmatpush3.bf16.msra.mxu0 %v1067_v32 }
  0x5f   :  { %811 = vmatprep.subr.bf16.mxu0 %v953_v0 }
  0x62   :  { %813 = vmatpush3.bf16.msra.mxu0 %v764_v35 }
  0x63   :  { %814 = vmatprep.subr.bf16.mxu0 %v953_v0 }
  0x66   :  { %816 = vmatpush3.bf16.msra.mxu0 %v767_v38 }
  0x67   :  { %817 = vmatprep.subr.bf16.mxu0 %v953_v0 }
 0x11c   :  { %v149_v40 = vpop.f32.mrb[0].mxu0 }
 0x11d   :  { %v150_v41 = vadd.f32 %v493_v39, %v149_v40  ;;  %v592_v42 = vpop.f32.mrb[1].mxu0 }
 0x11f   :  { %v169_v43 = vpack.c.bf16 %v150_v41, %v150_v41 }
 0x121   :  { %v170_v44 = vunpack.c.l.bf16 %v169_v43 }
 0x123   :  { %v171_v45 = vsub.f32 %v150_v41, %v170_v44 }
 0x125   :  { %626 = vmatmul.mubr.f32.vlgmr.msra.gmra.mrb[0].mxu1 %v171_v45 }
 0x126   :  { %771 = vmatpush3.bf16.msra.mxu1 %v1041_v13  ;;  %660 = vmatprep.mubr.msk.f32.mxu1 %vm954_vm0, %v955_v1 }
 0x127   :  { %772 = vmatprep.subr.bf16.mxu1 %v953_v0 }
 0x12a   :  { %774 = vmatpush3.bf16.msra.mxu1 %v1044_v15 }
 0x12b   :  { %775 = vmatprep.subr.bf16.mxu1 %v953_v0 }
 0x12e   :  { %777 = vmatpush3.bf16.msra.mxu1 %v1049_v21 }
 0x12f   :  { %778 = vmatprep.subr.bf16.mxu1 %v953_v0 }
 0x132   :  { %780 = vmatpush3.bf16.msra.mxu1 %v1054_v25 }
 0x133   :  { %781 = vmatprep.subr.bf16.mxu1 %v953_v0 }
 0x136   :  { %783 = vmatpush3.bf16.msra.mxu1 %v1059_v29 }
 0x137   :  { %784 = vmatprep.subr.bf16.mxu1 %v953_v0 }
 0x13a   :  { %786 = vmatpush3.bf16.msra.mxu1 %v1067_v32 }
 0x13b   :  { %787 = vmatprep.subr.bf16.mxu1 %v953_v0 }
 0x13e   :  { %789 = vmatpush3.bf16.msra.mxu1 %v764_v35 }
 0x13f   :  { %790 = vmatprep.subr.bf16.mxu1 %v953_v0 }
 0x142   :  { %792 = vmatpush3.bf16.msra.mxu1 %v767_v38 }
 0x145   :  { %661 = vmatmul.mubr.f32.vlgmr.msra.gmra.mrb[0].mxu1 %v170_v44 }
 0x218   :  { %v308_v46 = vpop.f32.mrb[0].mxu1 }
 0x219   :  { %v312_v47 = vsub.f32 %v150_v41, %v308_v46  ;;  %v662_v48 = vpop.f32.mrb[1].mxu1 }
 0x21b   :  { %v313_v49 = vmul.f32 %v312_v47, %v312_v47 }
 0x21d   :  { %v314_v50 = vpack.c.bf16 %v313_v49, %v313_v49 }
 0x21f   :  { %v315_v51 = vunpack.c.l.bf16 %v314_v50 }
 0x221   :  { %v316_v52 = vsub.f32 %v313_v49, %v315_v51 }
 0x223   :  { %696 = vmatmul.mubr.f32.vlgmr.msra.gmra.mrb[2].mxu0 %v316_v52 }
 0x224   :  { %819 = vmatpush3.bf16.msra.mxu0 %v1041_v13  ;;  %730 = vmatprep.mubr.msk.f32.mxu0 %vm954_vm0, %v955_v1 }
 0x225   :  { %820 = vmatprep.subr.bf16.mxu0 %v953_v0 }
 0x228   :  { %822 = vmatpush3.bf16.msra.mxu0 %v1044_v15 }
 0x229   :  { %823 = vmatprep.subr.bf16.mxu0 %v953_v0 }
 0x22c   :  { %825 = vmatpush3.bf16.msra.mxu0 %v1049_v21 }
 0x22d   :  { %826 = vmatprep.subr.bf16.mxu0 %v953_v0 }
 0x230   :  { %828 = vmatpush3.bf16.msra.mxu0 %v1054_v25 }
 0x231   :  { %829 = vmatprep.subr.bf16.mxu0 %v953_v0 }
 0x234   :  { %831 = vmatpush3.bf16.msra.mxu0 %v1059_v29 }
 0x235   :  { %832 = vmatprep.subr.bf16.mxu0 %v953_v0 }
 0x238   :  { %834 = vmatpush3.bf16.msra.mxu0 %v1067_v32 }
 0x239   :  { %835 = vmatprep.subr.bf16.mxu0 %v953_v0 }
 0x23c   :  { %837 = vmatpush3.bf16.msra.mxu0 %v764_v35 }
 0x23d   :  { %838 = vmatprep.subr.bf16.mxu0 %v953_v0 }
 0x240   :  { %840 = vmatpush3.bf16.msra.mxu0 %v767_v38 }
 0x243   :  { %731 = vmatmul.mubr.f32.vlgmr.msra.gmra.mrb[4].mxu0 %v315_v51 }
 0x2f6   :  { %v383_v53 = vpop.f32.mrb[2].mxu0 }
 0x2f7   :  { %v697_v54 = vpop.f32.mrb[3].mxu0 }
 0x316   :  { %v453_v55 = vpop.f32.mrb[4].mxu0 }
 0x317   :  { %v454_v56 = vadd.f32 %v453_v55, %v383_v53  ;;  %v732_v57 = vpop.f32.mrb[5].mxu0 }
 0x319   :  { %v457_v58 = vadd.f32 1e-05, %v454_v56 }
 0x31b   :  { %852 = vrsqrt.f32 %v457_v58 }
 0x325   :  { %v853_v59 = vpop.eup %852 }
 0x326   :  { %v459_v61 = vmul.f32 %v853_v59, %v312_v47 }
 0x328   :  { %v467_v63 = vmul.f32 %v495_v60, %v459_v61 }
 0x32a   :  { %v475_v0 = vadd.f32 %v496_v62, %v467_v63 }
 0x32c   :  { %476 = vst [vmem:[#allocation8] sm:$0xff] %v475_v0 }
 0x32d   :  { %931 = shalt.err (!%p928_p0)
}
 0x32e   :  { %s932_s17 = scalar_lea.hbm %s1143_s6, 128 }
 0x32f   :  { %p933_p1 = scmp.ne.s32.totalorder %s1143_s6, %s932_s17  ;;  %p936_p2 = scmp.lt.u32.totalorder %s932_s17, %s1143_s6 }
 0x331   :  { %p938_p3 = pnand %p936_p2, %p933_p1 }
 0x333   :  { %941 = shalt.err (!%p938_p3)
}
 0x334   :  { %486 = dma.vmem_to_hbm [thread:$0]  %s484_s14, 128, %s1143_s6, [#allocation4]  }
 0x335   :  { %946 = dma.done.wait [#allocation4], 128  }
 0x336   :  { %947 = vsyncadd [#allocation4], 4294967168 }
 0x337   :  { %490 = vsyncpa [#allocation3], 1 }
 0x338   :  { %491 = vsyncpa [#allocation6], 1 }
 0x339   :  { %492 = vsyncpa [#allocation4], 1 }

// kernel: tpu_custom_call.1
= control target key start
LH: loop header
LB: loop body
LE: loop exit
PB: predicated region body
PF: predicated region fallthrough
CT: control target
= control target key end

     0   :  { %11 = vsyncpa [#allocation3], 0  ;;  %s1137_s0 = inlined_call_operand.hbm [shape: f32[8,64], index: 0, kind: input, shape index: {}]   ;;  %s1138_s1 = inlined_call_operand.hbm [shape: f32[64,128], index: 1, kind: input, shape index: {}]   ;;  %s1139_s2 = inlined_call_operand.vmem [shape: f32[1,128], index: 2, kind: input, shape index: {}]   ;;  %s1140_s3 = inlined_call_operand.vmem [shape: f32[1,128], index: 3, kind: input, shape index: {}]   ;;  %s1141_s4 = inlined_call_operand.vmem [shape: f32[1,128], index: 4, kind: input, shape index: {}]   ;;  %s1142_s5 = inlined_call_operand.hbm [shape: f32[128,128], index: 5, kind: input, shape index: {}]   ;;  %s1143_s6 = inlined_call_operand.hbm [shape: f32[8,128], index: 6, kind: output, shape index: {}]  }
   0x1   :  { %12 = vsyncpa [#allocation6], 0 }
   0x2   :  { %13 = vsyncpa [#allocation4], 0  ;;  %s948_s21 = smov [#allocation5]   ;;  %s854_s25 = scalar_lea.hbm %s1138_s1, 1024 }
   0x3   :  { %s29_s22 = sshll.u32 %s948_s21, 4  ;;  %p855_p0 = scmp.ne.s32.totalorder %s1138_s1, %s854_s25  ;;  %s30_s22 = int_to_ptr.vmem [resolvable:$true] %s29_s22 }
   0x4   :  { %p858_p1 = scmp.lt.u32.totalorder %s854_s25, %s1138_s1 }
   0x6   :  { %p860_p2 = pnand %p858_p1, %p855_p0 }
   0x8   :  { %863 = shalt.err (!%p860_p2)
}
   0x9   :  { %s864_s30 = scalar_lea.vmem %s30_s22, 1024  ;;  %p869_p4 = scmp.lt.s32.totalorder %s30_s22, %s30_s22 }
   0xa   :  { %p865_p3 = scmp.ne.s32.totalorder %s30_s22, %s864_s30  ;;  %p870_p5 = scmp.lt.s32.totalorder %s864_s30, %s864_s30 }
   0xc   :  { %p871_p6 = por %p870_p5, %p869_p4 }
   0xe   :  { %p872_p7 = pnand %p871_p6, %p865_p3 }
  0x10   :  { %875 = shalt.err (!%p872_p7)
}
  0x11   :  { %s949_s7 = smov 128   ;;  %s950_s8 = smov 8  }
  0x12   :  { %35 = dma.hbm_to_vmem [thread:$0]  %s1138_s1, 1024, %s30_s22, [#allocation6], %s949_s7, %s949_s7, %s950_s8  }
  0x13   :  { %s951_s11 = smov [#allocation2]   ;;  %s952_s13 = smov [#allocation7]  }
  0x14   :  { %s20_s12 = sshll.u32 %s951_s11, 4  ;;  %s47_s14 = sshll.u32 %s952_s13, 4  ;;  %s21_s12 = int_to_ptr.vmem [resolvable:$true] %s20_s12  ;;  %s48_s14 = int_to_ptr.vmem [resolvable:$true] %s47_s14 }
  0x15   :  { %s876_s17 = scalar_lea.hbm %s1137_s0, 128 }
  0x16   :  { %p877_p8 = scmp.ne.s32.totalorder %s1137_s0, %s876_s17  ;;  %p880_p9 = scmp.lt.u32.totalorder %s876_s17, %s1137_s0 }
  0x18   :  { %p882_p10 = pnand %p880_p9, %p877_p8 }
  0x1a   :  { %885 = shalt.err (!%p882_p10)
}
  0x1b   :  { %s886_s1 = scalar_lea.vmem %s21_s12, 128  ;;  %p891_p12 = scmp.lt.s32.totalorder %s21_s12, %s21_s12 }
  0x1c   :  { %p887_p11 = scmp.ne.s32.totalorder %s21_s12, %s886_s1  ;;  %p892_p13 = scmp.lt.s32.totalorder %s886_s1, %s886_s1 }
  0x1e   :  { %p893_p0 = por %p892_p13, %p891_p12 }
  0x20   :  { %p894_p1 = pnand %p893_p0, %p887_p11 }
  0x22   :  { %897 = shalt.err (!%p894_p1)
}
  0x23   :  { %23 = dma.hbm_to_vmem [thread:$0]  %s1137_s0, 128, %s21_s12, [#allocation3]  }
  0x24   :  { %s898_s26 = scalar_lea.hbm %s1142_s5, 2048 }
  0x25   :  { %p899_p2 = scmp.ne.s32.totalorder %s1142_s5, %s898_s26  ;;  %p902_p3 = scmp.lt.u32.totalorder %s898_s26, %s1142_s5 }
  0x27   :  { %p904_p4 = pnand %p902_p3, %p899_p2 }
  0x29   :  { %907 = shalt.err (!%p904_p4)
}
  0x2a   :  { %s908_s9 = scalar_lea.vmem %s48_s14, 2048  ;;  %p913_p6 = scmp.lt.s32.totalorder %s48_s14, %s48_s14 }
  0x2b   :  { %p909_p5 = scmp.ne.s32.totalorder %s48_s14, %s908_s9  ;;  %p914_p7 = scmp.lt.s32.totalorder %s908_s9, %s908_s9 }
  0x2d   :  { %p915_p8 = por %p914_p7, %p913_p6 }
  0x2f   :  { %p916_p9 = pnand %p915_p8, %p909_p5 }
  0x31   :  { %919 = shalt.err (!%p916_p9)
}
  0x32   :  { %53 = dma.hbm_to_vmem [thread:$0]  %s1142_s5, 2048, %s48_s14, [#allocation6], %s949_s7, %s949_s7, %s950_s8  }
  0x33   :  { %942 = dma.done.wait [#allocation3], 128  }
  0x34   :  { %943 = vsyncadd [#allocation3], 4294967168 }
  0x35   :  { %944 = dma.done.wait [#allocation6], 3072  }
  0x36   :  { %945 = vsyncadd [#allocation6], 4294964224  ;;  %v953_v0 = vmov 0.0|0.0   ;;  %vm954_vm0 = vmmov 0   ;;  %v955_v1 = vmov 0.0   ;;  %v64_v2 = vld [vmem:[#allocation5] sm:$0xff] }
  0x37   :  { %733 = vmatprep.subr.bf16.mxu0 %v953_v0  ;;  %590 = vmatprep.mubr.msk.f32.mxu0 %vm954_vm0, %v955_v1  ;;  %v65_v3 = vld [vmem:[#allocation5 + $0x8] sm:$0xff]  ;;  %v66_v4 = vld [vmem:[#allocation5 + $0x10] sm:$0xff]  ;;  %v67_v6 = vld [vmem:[#allocation5 + $0x18] sm:$0xff]  ;;  %vm79_vm1 = vcmask 523264   ;;  %s956_s13 = smov [#allocation8]  }
  0x38   :  { %745 = vmatprep.subr.bf16.mxu1 %v953_v0  ;;  %625 = vmatprep.mubr.msk.f32.mxu1 %vm954_vm0, %v955_v1  ;;  %v734_v5 = vpack.c.bf16 %v65_v3, %v64_v2  ;;  %v737_v7 = vpack.c.bf16 %v67_v6, %v66_v4  ;;  %v153_v8 = vld [vmem:[#allocation7] sm:$0xff]  ;;  %v154_v9 = vld [vmem:[#allocation7 + $0x8] sm:$0xff]  ;;  %v155_v10 = vld [vmem:[#allocation7 + $0x10] sm:$0xff]  ;;  %s483_s14 = sshll.u32 %s956_s13, 4  ;;  %s484_s14 = int_to_ptr.vmem [resolvable:$true] %s483_s14 }
  0x39   :  { %v68_v11 = vld [vmem:[#allocation5 + $0x20] sm:$0xff]  ;;  %v69_v12 = vld [vmem:[#allocation5 + $0x28] sm:$0xff]  ;;  %v1041_v13 = vpack.c.bf16 %v154_v9, %v153_v8  ;;  %v156_v14 = vld [vmem:[#allocation7 + $0x18] sm:$0xff]  ;;  %s920_s15 = scalar_lea.vmem %s484_s14, 128  ;;  %p925_p11 = scmp.lt.s32.totalorder %s484_s14, %s484_s14 }
  0x3a   :  { %735 = vmatpush3.bf16.msra.mxu0 %v734_v5  ;;  %v1044_v15 = vpack.c.bf16 %v156_v14, %v155_v10  ;;  %v740_v16 = vpack.c.bf16 %v69_v12, %v68_v11  ;;  %v157_v17 = vld [vmem:[#allocation7 + $0x20] sm:$0xff]  ;;  %v158_v18 = vld [vmem:[#allocation7 + $0x28] sm:$0xff]  ;;  %v70_v19 = vld [vmem:[#allocation5 + $0x30] sm:$0xff]  ;;  %p921_p10 = scmp.ne.s32.totalorder %s484_s14, %s920_s15  ;;  %p926_p12 = scmp.lt.s32.totalorder %s920_s15, %s920_s15 }
  0x3b   :  { %736 = vmatprep.subr.bf16.mxu0 %v953_v0  ;;  %747 = vmatpush3.bf16.msra.mxu1 %v1041_v13  ;;  %v71_v20 = vld [vmem:[#allocation5 + $0x38] sm:$0xff]  ;;  %v1049_v21 = vpack.c.bf16 %v158_v18, %v157_v17  ;;  %v159_v23 = vld [vmem:[#allocation7 + $0x30] sm:$0xff]  ;;  %v161_v27 = vld [vmem:[#allocation7 + $0x40] sm:$0xff] }
  0x3c   :  { %748 = vmatprep.subr.bf16.mxu1 %v953_v0  ;;  %v743_v22 = vpack.c.bf16 %v71_v20, %v70_v19  ;;  %v160_v24 = vld [vmem:[#allocation7 + $0x38] sm:$0xff]  ;;  %v162_v28 = vld [vmem:[#allocation7 + $0x48] sm:$0xff]  ;;  %v163_v30 = vld [vmem:[#allocation7 + $0x50] sm:$0xff]  ;;  %p927_p13 = por %p926_p12, %p925_p11 }
  0x3d   :  { %v1054_v25 = vpack.c.bf16 %v160_v24, %v159_v23  ;;  %v63_v26 = vld [vmem:[#allocation2] sm:$0xff]  ;;  %v1059_v29 = vpack.c.bf16 %v162_v28, %v161_v27  ;;  %v165_v33 = vld [vmem:[#allocation7 + $0x60] sm:$0xff]  ;;  %v166_v34 = vld [vmem:[#allocation7 + $0x68] sm:$0xff] }
  0x3e   :  { %738 = vmatpush3.bf16.msra.mxu0 %v737_v7  ;;  %v164_v31 = vld [vmem:[#allocation7 + $0x58] sm:$0xff]  ;;  %v764_v35 = vpack.c.bf16 %v166_v34, %v165_v33  ;;  %v167_v36 = vld [vmem:[#allocation7 + $0x70] sm:$0xff]  ;;  %p928_p0 = pnand %p927_p13, %p921_p10 }
  0x3f   :  { %739 = vmatprep.subr.bf16.mxu0 %v953_v0  ;;  %750 = vmatpush3.bf16.msra.mxu1 %v1044_v15  ;;  %v1067_v32 = vpack.c.bf16 %v164_v31, %v163_v30  ;;  %v168_v37 = vld [vmem:[#allocation7 + $0x78] sm:$0xff] }
  0x40   :  { %751 = vmatprep.subr.bf16.mxu1 %v953_v0  ;;  %v767_v38 = vpack.c.bf16 %v168_v37, %v167_v36  ;;  %v493_v39 = vld [vmem:[%s1139_s2] ss:$0 sm:$0xff] }
  0x41   :  { %v495_v60 = vld [vmem:[%s1140_s3] ss:$0 sm:$0xff] }
  0x42   :  { %741 = vmatpush3.bf16.msra.mxu0 %v740_v16  ;;  %v496_v62 = vld [vmem:[%s1141_s4] ss:$0 sm:$0xff] }
  0x43   :  { %742 = vmatprep.subr.bf16.mxu0 %v953_v0  ;;  %753 = vmatpush3.bf16.msra.mxu1 %v1049_v21 }
  0x44   :  { %754 = vmatprep.subr.bf16.mxu1 %v953_v0 }
  0x46   :  { %744 = vmatpush3.bf16.msra.mxu0 %v743_v22 }
  0x47   :  { %793 = vmatprep.subr.bf16.mxu0 %v953_v0  ;;  %756 = vmatpush3.bf16.msra.mxu1 %v1054_v25 }
  0x48   :  { %757 = vmatprep.subr.bf16.mxu1 %v953_v0 }
  0x49   :  { %591 = vmatmul.mubr.msk.f32.vlgmr.msra.gmra.mrb[0].mxu0 %vm79_vm1, %v63_v26 }
  0x4a   :  { %795 = vmatpush3.bf16.msra.mxu0 %v1041_v13  ;;  %695 = vmatprep.mubr.msk.f32.mxu0 %vm954_vm0, %v955_v1 }
  0x4b   :  { %796 = vmatprep.subr.bf16.mxu0 %v953_v0  ;;  %759 = vmatpush3.bf16.msra.mxu1 %v1059_v29 }
  0x4c   :  { %760 = vmatprep.subr.bf16.mxu1 %v953_v0 }
  0x4e   :  { %798 = vmatpush3.bf16.msra.mxu0 %v1044_v15 }
  0x4f   :  { %799 = vmatprep.subr.bf16.mxu0 %v953_v0  ;;  %762 = vmatpush3.bf16.msra.mxu1 %v1067_v32 }
  0x50   :  { %763 = vmatprep.subr.bf16.mxu1 %v953_v0 }
  0x52   :  { %801 = vmatpush3.bf16.msra.mxu0 %v1049_v21 }
  0x53   :  { %802 = vmatprep.subr.bf16.mxu0 %v953_v0  ;;  %765 = vmatpush3.bf16.msra.mxu1 %v764_v35 }
  0x54   :  { %766 = vmatprep.subr.bf16.mxu1 %v953_v0 }
  0x56   :  { %804 = vmatpush3.bf16.msra.mxu0 %v1054_v25 }
  0x57   :  { %805 = vmatprep.subr.bf16.mxu0 %v953_v0  ;;  %768 = vmatpush3.bf16.msra.mxu1 %v767_v38 }
  0x58   :  { %769 = vmatprep.subr.bf16.mxu1 %v953_v0 }
  0x5a   :  { %807 = vmatpush3.bf16.msra.mxu0 %v1059_v29 }
  0x5b   :  { %808 = vmatprep.subr.bf16.mxu0 %v953_v0 }
  0x5e   :  { %810 = vmatpush3.bf16.msra.mxu0 %v1067_v32 }
  0x5f   :  { %811 = vmatprep.subr.bf16.mxu0 %v953_v0 }
  0x62   :  { %813 = vmatpush3.bf16.msra.mxu0 %v764_v35 }
  0x63   :  { %814 = vmatprep.subr.bf16.mxu0 %v953_v0 }
  0x66   :  { %816 = vmatpush3.bf16.msra.mxu0 %v767_v38 }
  0x67   :  { %817 = vmatprep.subr.bf16.mxu0 %v953_v0 }
 0x11c   :  { %v149_v40 = vpop.f32.mrb[0].mxu0 }
 0x11d   :  { %v150_v41 = vadd.f32 %v493_v39, %v149_v40  ;;  %v592_v42 = vpop.f32.mrb[1].mxu0 }
 0x11f   :  { %v169_v43 = vpack.c.bf16 %v150_v41, %v150_v41 }
 0x121   :  { %v170_v44 = vunpack.c.l.bf16 %v169_v43 }
 0x123   :  { %v171_v45 = vsub.f32 %v150_v41, %v170_v44 }
 0x125   :  { %626 = vmatmul.mubr.f32.vlgmr.msra.gmra.mrb[0].mxu1 %v171_v45 }
 0x126   :  { %771 = vmatpush3.bf16.msra.mxu1 %v1041_v13  ;;  %660 = vmatprep.mubr.msk.f32.mxu1 %vm954_vm0, %v955_v1 }
 0x127   :  { %772 = vmatprep.subr.bf16.mxu1 %v953_v0 }
 0x12a   :  { %774 = vmatpush3.bf16.msra.mxu1 %v1044_v15 }
 0x12b   :  { %775 = vmatprep.subr.bf16.mxu1 %v953_v0 }
 0x12e   :  { %777 = vmatpush3.bf16.msra.mxu1 %v1049_v21 }
 0x12f   :  { %778 = vmatprep.subr.bf16.mxu1 %v953_v0 }
 0x132   :  { %780 = vmatpush3.bf16.msra.mxu1 %v1054_v25 }
 0x133   :  { %781 = vmatprep.subr.bf16.mxu1 %v953_v0 }
 0x136   :  { %783 = vmatpush3.bf16.msra.mxu1 %v1059_v29 }
 0x137   :  { %784 = vmatprep.subr.bf16.mxu1 %v953_v0 }
 0x13a   :  { %786 = vmatpush3.bf16.msra.mxu1 %v1067_v32 }
 0x13b   :  { %787 = vmatprep.subr.bf16.mxu1 %v953_v0 }
 0x13e   :  { %789 = vmatpush3.bf16.msra.mxu1 %v764_v35 }
 0x13f   :  { %790 = vmatprep.subr.bf16.mxu1 %v953_v0 }
 0x142   :  { %792 = vmatpush3.bf16.msra.mxu1 %v767_v38 }
 0x145   :  { %661 = vmatmul.mubr.f32.vlgmr.msra.gmra.mrb[0].mxu1 %v170_v44 }
 0x218   :  { %v308_v46 = vpop.f32.mrb[0].mxu1 }
 0x219   :  { %v312_v47 = vsub.f32 %v150_v41, %v308_v46  ;;  %v662_v48 = vpop.f32.mrb[1].mxu1 }
 0x21b   :  { %v313_v49 = vmul.f32 %v312_v47, %v312_v47 }
 0x21d   :  { %v314_v50 = vpack.c.bf16 %v313_v49, %v313_v49 }
 0x21f   :  { %v315_v51 = vunpack.c.l.bf16 %v314_v50 }
 0x221   :  { %v316_v52 = vsub.f32 %v313_v49, %v315_v51 }
 0x223   :  { %696 = vmatmul.mubr.f32.vlgmr.msra.gmra.mrb[2].mxu0 %v316_v52 }
 0x224   :  { %819 = vmatpush3.bf16.msra.mxu0 %v1041_v13  ;;  %730 = vmatprep.mubr.msk.f32.mxu0 %vm954_vm0, %v955_v1 }
 0x225   :  { %820 = vmatprep.subr.bf16.mxu0 %v953_v0 }
 0x228   :  { %822 = vmatpush3.bf16.msra.mxu0 %v1044_v15 }
 0x229   :  { %823 = vmatprep.subr.bf16.mxu0 %v953_v0 }
 0x22c   :  { %825 = vmatpush3.bf16.msra.mxu0 %v1049_v21 }
 0x22d   :  { %826 = vmatprep.subr.bf16.mxu0 %v953_v0 }
 0x230   :  { %828 = vmatpush3.bf16.msra.mxu0 %v1054_v25 }
 0x231   :  { %829 = vmatprep.subr.bf16.mxu0 %v953_v0 }
 0x234   :  { %831 = vmatpush3.bf16.msra.mxu0 %v1059_v29 }
 0x235   :  { %832 = vmatprep.subr.bf16.mxu0 %v953_v0 }
 0x238   :  { %834 = vmatpush3.bf16.msra.mxu0 %v1067_v32 }
 0x239   :  { %835 = vmatprep.subr.bf16.mxu0 %v953_v0 }
 0x23c   :  { %837 = vmatpush3.bf16.msra.mxu0 %v764_v35 }
 0x23d   :  { %838 = vmatprep.subr.bf16.mxu0 %v953_v0 }
 0x240   :  { %840 = vmatpush3.bf16.msra.mxu0 %v767_v38 }
 0x243   :  { %731 = vmatmul.mubr.f32.vlgmr.msra.gmra.mrb[4].mxu0 %v315_v51 }
 0x2f6   :  { %v383_v53 = vpop.f32.mrb[2].mxu0 }
 0x2f7   :  { %v697_v54 = vpop.f32.mrb[3].mxu0 }
 0x316   :  { %v453_v55 = vpop.f32.mrb[4].mxu0 }
 0x317   :  { %v454_v56 = vadd.f32 %v453_v55, %v383_v53  ;;  %v732_v57 = vpop.f32.mrb[5].mxu0 }
 0x319   :  { %v457_v58 = vadd.f32 1e-05, %v454_v56 }
 0x31b   :  { %852 = vrsqrt.f32 %v457_v58 }
 0x325   :  { %v853_v59 = vpop.eup %852 }
 0x326   :  { %v459_v61 = vmul.f32 %v853_v59, %v312_v47 }
 0x328   :  { %v467_v63 = vmul.f32 %v495_v60, %v459_v61 }
 0x32a   :  { %v475_v0 = vadd.f32 %v496_v62, %v467_v63 }
 0x32c   :  { %476 = vst [vmem:[#allocation8] sm:$0xff] %v475_v0 }
 0x32d   :  { %931 = shalt.err (!%p928_p0)
}
 0x32e   :  { %s932_s17 = scalar_lea.hbm %s1143_s6, 128 }
 0x32f   :  { %p933_p1 = scmp.ne.s32.totalorder %s1143_s6, %s932_s17  ;;  %p936_p2 = scmp.lt.u32.totalorder %s932_s17, %s1143_s6 }
 0x331   :  { %p938_p3 = pnand %p936_p2, %p933_p1 }
 0x333   :  { %941 = shalt.err (!%p938_p3)
}
 0x334   :  { %486 = dma.vmem_to_hbm [thread:$0]  %s484_s14, 128, %s1143_s6, [#allocation4]  }
 0x335   :  { %946 = dma.done.wait [#allocation4], 128  }
 0x336   :  { %947 = vsyncadd [#allocation4], 4294967168 }
 0x337   :  { %490 = vsyncpa [#allocation3], 1 }
 0x338   :  { %491 = vsyncpa [#allocation6], 1 }
 0x339   :  { %492 = vsyncpa [#allocation4], 1 }

</bundles_post_ra>
